<compile_context>
chip_gen: v6e
topology: v6e:2x2x1
jax: 0.10.0
libtpu: 0.0.40
codegen_flags: <defaults>
</compile_context>

<pallas_src>
import functools

import jax
import jax.numpy as jnp
from jax.experimental import pallas as pl
from jax.experimental.pallas import tpu as pltpu


# Hyper-parameters from AsymmetricLoss_partial.__init__ (defaults, no weights).
GAMMA_NEG = 4.0   # kernel specializes pow() for gamma_neg=4
GAMMA_POS = 1.0   # and gamma_pos=1
CLIP = 0.05
EPS = 1e-8
THRESH_POS = 0.9
THRESH_NEG = -0.9


def _asl_partial_kernel(x_ref, y_ref, out_ref, *, total_rows, block_rows,
                        mask_tail):
    """One (TB, C) tile -> lane-dense (acc_rows, C) partial-sum block."""
    x = x_ref[...].astype(jnp.float32)
    y = y_ref[...].astype(jnp.float32)

    if mask_tail:
        # BlockSpec pads the last row-tile; zero the padded rows so garbage
        # (possibly NaN/Inf) never reaches sigmoid/log or the sum.
        row0 = pl.program_id(0) * block_rows
        rows = row0 + jax.lax.broadcasted_iota(jnp.int32, x.shape, 0)
        valid = rows < total_rows
        x = jnp.where(valid, x, 0.0)
        y = jnp.where(valid, y, 0.0)   # y==0 -> no label -> zero contribution

    # sigmoid / clipped (1 - sigmoid)
    xs_pos = jax.nn.sigmoid(x)
    xs_neg = jnp.minimum(1.0 - xs_pos + CLIP, 1.0)

    # partial-label masks (mutually exclusive)
    y_pos = y > THRESH_POS
    y_neg = y < THRESH_NEG
    m = jnp.logical_or(y_pos, y_neg).astype(jnp.float32)

    # single log over the selected probability (replaces two masked logs)
    p = jnp.where(y_pos, xs_pos, xs_neg)
    loss = m * jnp.log(jnp.maximum(p, EPS))

    # asymmetric focal weight: (1 - pt)^gamma with gamma in {1, 4, 0}
    # -> select-based power (pure VPU), no exp/log pair on the EUP.
    b = 1.0 - p * m          # pt = p * m
    b2 = b * b
    w = jnp.where(y_pos, b, jnp.where(y_neg, b2 * b2, 1.0))
    loss = loss * w

    tb, c = loss.shape
    acc_rows = out_ref.shape[0]
    if tb == acc_rows:
        out_ref[...] = loss
    elif acc_rows == 8 and tb % 8 == 0:
        # tile-aligned fold: (TB, C) -> (TB//8, 8, C) is a no-move retile;
        # the sum over axis 0 is plain vreg adds on the VPU.
        out_ref[...] = loss.reshape(tb // 8, 8, c).sum(axis=0)
    else:
        out_ref[...] = jnp.sum(loss, axis=0, keepdims=True)


def _choose_block_rows(B, C):
    """Row-tile size: 2 inputs x 2 pipeline buffers of f32 tiles <= ~8 MiB."""
    budget_bytes = 8 * 1024 * 1024
    per_row_bytes = 2 * 2 * C * 4            # 2 inputs, 2 buffers, f32
    tb = budget_bytes // max(per_row_bytes, 1)
    tb = min(512, tb)
    tb = max(8, (tb // 8) * 8)
    # TODO(synk): for absurdly wide C (>65k labels) add column tiling too.
    if B <= tb:
        return B
    return tb


@functools.partial(jax.jit, static_argnames=("if_partial", "block_rows"))
def asymmetric_loss_partial(x, y, if_partial=True, block_rows=None):
    """JAX/Pallas equivalent of AsymmetricLoss_partial.forward(x, y, if_partial)."""
    assert x.shape == y.shape and x.ndim == 2
    B, C = x.shape

    if block_rows is None:
        TB = _choose_block_rows(B, C)
    else:
        TB = min(int(block_rows), B)
        if TB < B:
            assert TB % 8 == 0, "block_rows must be a multiple of 8 when tiling"

    num_blocks = pl.cdiv(B, TB)
    acc_rows = 8 if TB % 8 == 0 else 1       # (TB%8!=0 only when TB == B)
    mask_tail = (B % TB) != 0

    kernel = functools.partial(
        _asl_partial_kernel,
        total_rows=B, block_rows=TB, mask_tail=mask_tail)

    partials = pl.pallas_call(
        kernel,
        out_shape=jax.ShapeDtypeStruct((num_blocks * acc_rows, C), jnp.float32),
        grid_spec=pltpu.PrefetchScalarGridSpec(
            num_scalar_prefetch=0,
            grid=(num_blocks,),
            in_specs=[
                pl.BlockSpec((TB, C), lambda i: (i, 0)),
                pl.BlockSpec((TB, C), lambda i: (i, 0)),
            ],
            out_specs=pl.BlockSpec((acc_rows, C), lambda i: (i, 0)),
        ),
        compiler_params=pltpu.CompilerParams(
            dimension_semantics=("parallel",),   # no carried state; v7x 2 TCs
        ),
    )(x, y)

    total = jnp.sum(partials)                 # tiny final reduction in JAX
    denom = jnp.float32(B) if if_partial else jnp.float32(B * C)
    return -total / denom


def _reference(x, y, if_partial=True):
    """Pure-JAX reference mirroring the PyTorch forward exactly."""
    x = x.astype(jnp.float32)
    y = y.astype(jnp.float32)
    xs_pos = jax.nn.sigmoid(x)
    xs_neg = jnp.minimum(1.0 - xs_pos + CLIP, 1.0)
    y_pos = (y > THRESH_POS).astype(jnp.float32)
    y_neg = (y < THRESH_NEG).astype(jnp.float32)
    loss = y_pos * jnp.log(jnp.maximum(xs_pos, EPS)) + y_neg * jnp.log(
        jnp.maximum(xs_neg, EPS))
    pt = xs_pos * y_pos + xs_neg * y_neg
    gamma = GAMMA_POS * y_pos + GAMMA_NEG * y_neg
    loss = loss * jnp.power(1.0 - pt, gamma)
    if if_partial:
        return -jnp.sum(loss) / x.shape[0]
    return -jnp.mean(loss)


if __name__ == "__main__":
    # --- primary small test: single lane-dense block -------------------------
    key = jax.random.PRNGKey(0)
    kx, ky = jax.random.split(key)
    B, C = 8, 128
    x = jax.random.normal(kx, (B, C), dtype=jnp.float32) * 3.0
    # partial labels in {-1, 0, +1} (negative / unknown / positive)
    y = jax.random.randint(ky, (B, C), minval=-1, maxval=2).astype(jnp.float32)

    out = jax.block_until_ready(asymmetric_loss_partial(x, y, if_partial=True))
    ref = _reference(x, y, if_partial=True)
    assert jnp.allclose(out, ref, rtol=1e-4, atol=1e-4), (out, ref)

    # --- tiled path with a padded tail tile (small, forced block_rows) -------
    kx2, ky2 = jax.random.split(jax.random.PRNGKey(1))
    B2, C2 = 40, 80
    x2 = jax.random.normal(kx2, (B2, C2), dtype=jnp.float32) * 3.0
    y2 = jax.random.randint(ky2, (B2, C2), minval=-1, maxval=2).astype(jnp.float32)

    out2 = jax.block_until_ready(
        asymmetric_loss_partial(x2, y2, if_partial=True, block_rows=16))
    ref2 = _reference(x2, y2, if_partial=True)
    assert jnp.allclose(out2, ref2, rtol=1e-4, atol=1e-4), (out2, ref2)

    out3 = jax.block_until_ready(
        asymmetric_loss_partial(x2, y2, if_partial=False, block_rows=16))
    ref3 = _reference(x2, y2, if_partial=False)
    assert jnp.allclose(out3, ref3, rtol=1e-4, atol=1e-4), (out3, ref3)

    print("KERNEL_OK")
</pallas_src>

<mosaic_0001>
module attributes {stable_mosaic.version = 11 : i64} {
  func.func @_asl_partial_kernel(%arg0: i32, %arg1: memref<8x128xf32, #tpu.memory_space<vmem>>, %arg2: memref<8x128xf32, #tpu.memory_space<vmem>>, %arg3: memref<8x128xf32, #tpu.memory_space<vmem>>) attributes {dimension_semantics = [#tpu.dimension_semantics<parallel>], iteration_bounds = array<i64: 1>, scalar_prefetch = 0 : i64, scratch_operands = 0 : i64, tpu.core_type = #tpu.core_type<tc>, window_params = [{transform_indices = @transform_0, window_bounds = array<i64: 8, 128>}, {transform_indices = @transform_1, window_bounds = array<i64: 8, 128>}, {transform_indices = @transform_2, window_bounds = array<i64: 8, 128>}]} {
    %c0 = arith.constant 0 : index
    %c0_0 = arith.constant 0 : index
    %0 = vector.load %arg1[%c0, %c0_0] : memref<8x128xf32, #tpu.memory_space<vmem>>, vector<8x128xf32>
    %c0_1 = arith.constant 0 : index
    %c0_2 = arith.constant 0 : index
    %1 = vector.load %arg2[%c0_1, %c0_2] : memref<8x128xf32, #tpu.memory_space<vmem>>, vector<8x128xf32>
    %2 = arith.negf %0 : vector<8x128xf32>
    %3 = math.exp %2 : vector<8x128xf32>
    %cst = arith.constant 1.000000e+00 : f32
    %4 = vector.broadcast %cst : f32 to vector<8x128xf32>
    %5 = arith.addf %4, %3 : vector<8x128xf32>
    %6 = arith.divf %4, %5 : vector<8x128xf32>
    %cst_3 = arith.constant 1.000000e+00 : f32
    %7 = vector.broadcast %cst_3 : f32 to vector<8x128xf32>
    %8 = arith.subf %7, %6 : vector<8x128xf32>
    %cst_4 = arith.constant 5.000000e-02 : f32
    %9 = vector.broadcast %cst_4 : f32 to vector<8x128xf32>
    %10 = arith.addf %8, %9 : vector<8x128xf32>
    %cst_5 = arith.constant 1.000000e+00 : f32
    %11 = vector.broadcast %cst_5 : f32 to vector<8x128xf32>
    %12 = arith.minimumf %10, %11 : vector<8x128xf32>
    %cst_6 = arith.constant 0.899999976 : f32
    %13 = vector.broadcast %cst_6 : f32 to vector<8x128xf32>
    %14 = arith.cmpf ogt, %1, %13 : vector<8x128xf32>
    %cst_7 = arith.constant -0.899999976 : f32
    %15 = vector.broadcast %cst_7 : f32 to vector<8x128xf32>
    %16 = arith.cmpf olt, %1, %15 : vector<8x128xf32>
    %17 = arith.ori %14, %16 : vector<8x128xi1>
    %18 = arith.extui %17 : vector<8x128xi1> to vector<8x128xi32>
    %19 = arith.sitofp %18 : vector<8x128xi32> to vector<8x128xf32>
    %20 = arith.select %14, %6, %12 : vector<8x128xi1>, vector<8x128xf32>
    %cst_8 = arith.constant 9.99999993E-9 : f32
    %21 = vector.broadcast %cst_8 : f32 to vector<8x128xf32>
    %22 = arith.maximumf %20, %21 : vector<8x128xf32>
    %23 = math.log %22 : vector<8x128xf32>
    %24 = arith.mulf %19, %23 : vector<8x128xf32>
    %25 = arith.mulf %20, %19 : vector<8x128xf32>
    %cst_9 = arith.constant 1.000000e+00 : f32
    %26 = vector.broadcast %cst_9 : f32 to vector<8x128xf32>
    %27 = arith.subf %26, %25 : vector<8x128xf32>
    %28 = arith.mulf %27, %27 : vector<8x128xf32>
    %29 = arith.mulf %28, %28 : vector<8x128xf32>
    %cst_10 = arith.constant 1.000000e+00 : f32
    %30 = vector.broadcast %cst_10 : f32 to vector<8x128xf32>
    %31 = arith.select %16, %29, %30 : vector<8x128xi1>, vector<8x128xf32>
    %32 = arith.select %14, %27, %31 : vector<8x128xi1>, vector<8x128xf32>
    %33 = arith.mulf %24, %32 : vector<8x128xf32>
    %c0_11 = arith.constant 0 : index
    %c0_12 = arith.constant 0 : index
    %34 = vector.load %arg3[%c0_11, %c0_12] : memref<8x128xf32, #tpu.memory_space<vmem>>, vector<8x128xf32>
    tpu.vector_store %arg3[%c0_11, %c0_12], %33 {strides = array<i32>} : memref<8x128xf32, #tpu.memory_space<vmem>>, vector<8x128xf32>,
    return
  }
  func.func @transform_0(%arg0: i32) -> (i32, i32) {
    %c0_i32 = arith.constant 0 : i32
    %c0_i32_0 = arith.constant 0 : i32
    return %arg0, %c0_i32 : i32, i32
  }
  func.func @transform_1(%arg0: i32) -> (i32, i32) {
    %c0_i32 = arith.constant 0 : i32
    %c0_i32_0 = arith.constant 0 : i32
    return %arg0, %c0_i32 : i32, i32
  }
  func.func @transform_2(%arg0: i32) -> (i32, i32) {
    %c0_i32 = arith.constant 0 : i32
    %c0_i32_0 = arith.constant 0 : i32
    return %arg0, %c0_i32 : i32, i32
  }
}

</mosaic_0001>

<bundles_post_ra>
// kernel: asymmetric_loss_partial.1
= control target key start
LH: loop header
LB: loop body
LE: loop exit
PB: predicated region body
PF: predicated region fallthrough
CT: control target
= control target key end

     0   :  { %7 = vsyncpa [#allocation3], 0  ;;  %s157_s0 = inlined_call_operand.hbm [shape: f32[8,128], index: 0, kind: input, shape index: {}]   ;;  %s158_s1 = inlined_call_operand.hbm [shape: f32[8,128], index: 1, kind: input, shape index: {}]   ;;  %s159_s2 = inlined_call_operand.vmem [shape: f32[8,128], index: 2, kind: output, shape index: {}]  }
   0x1   :  { %8 = vsyncpa [#allocation5], 0  ;;  %s125_s9 = smov [#allocation2]   ;;  %s126_s11 = smov [#allocation4]  }
   0x2   :  { %s15_s10 = sshll.u32 %s125_s9, 4  ;;  %s25_s12 = sshll.u32 %s126_s11, 4  ;;  %s16_s10 = int_to_ptr.vmem [resolvable:$true] %s15_s10  ;;  %s26_s12 = int_to_ptr.vmem [resolvable:$true] %s25_s12 }
   0x3   :  { %s89_s13 = scalar_lea.vmem %s16_s10, 128  ;;  %p94_p1 = scmp.lt.s32.totalorder %s16_s10, %s16_s10 }
   0x4   :  { %p90_p0 = scmp.ne.s32.totalorder %s16_s10, %s89_s13  ;;  %p95_p2 = scmp.lt.s32.totalorder %s89_s13, %s89_s13 }
   0x6   :  { %p96_p3 = por %p95_p2, %p94_p1 }
   0x8   :  { %p97_p4 = pnand %p96_p3, %p90_p0 }
   0xa   :  { %100 = shalt.err (!%p97_p4)
}
   0xb   :  { %18 = dma.hbm_to_vmem [thread:$0]  %s157_s0, 128, %s16_s10, [#allocation3]  }
   0xc   :  { %s109_s16 = scalar_lea.vmem %s26_s12, 128  ;;  %p114_p6 = scmp.lt.s32.totalorder %s26_s12, %s26_s12 }
   0xd   :  { %p110_p5 = scmp.ne.s32.totalorder %s26_s12, %s109_s16  ;;  %p115_p7 = scmp.lt.s32.totalorder %s109_s16, %s109_s16 }
   0xf   :  { %p116_p8 = por %p115_p7, %p114_p6 }
  0x11   :  { %p117_p9 = pnand %p116_p8, %p110_p5 }
  0x13   :  { %120 = shalt.err (!%p117_p9)
}
  0x14   :  { %28 = dma.hbm_to_vmem [thread:$0]  %s158_s1, 128, %s26_s12, [#allocation5]  }
  0x15   :  { %121 = dma.done.wait [#allocation3], 128  }
  0x16   :  { %122 = vsyncadd [#allocation3], 4294967168 }
  0x17   :  { %123 = dma.done.wait [#allocation5], 128  }
  0x18   :  { %124 = vsyncadd [#allocation5], 4294967168  ;;  %v35_v0 = vld [vmem:[#allocation2] sm:$0xff]  ;;  %v36_v4 = vld [vmem:[#allocation4] sm:$0xff]  ;;  %v127_v9 = vmov 0.0  }
  0x19   :  { %v70_v1 = vmul.f32 -1.442695, %v35_v0  ;;  %vm47_vm0 = vcmp.lt.f32.partialorder %v36_v4, -0.9  ;;  %vm46_vm1 = vcmp.gt.f32.partialorder %v36_v4, 0.9 }
  0x1a   :  { %vm48_vm2 = vmor %vm46_vm1, %vm47_vm0 }
  0x1b   :  { %75 = vpow2.f32 %v70_v1  ;;  %v71_v10 = vsel %vm48_vm2, 1.0, %v127_v9 }
  0x28   :  { %v76_v2 = vpop.eup %75 }
  0x29   :  { %v40_v3 = vadd.f32 1.0, %v76_v2 }
  0x2b   :  { %77 = vrcp.f32 %v40_v3 }
  0x38   :  { %v78_v5 = vpop.eup %77 }
  0x39   :  { %v43_v6 = vsub.f32 1.0, %v78_v5 }
  0x3b   :  { %v44_v7 = vadd.f32 0.05, %v43_v6 }
  0x3d   :  { %v45_v8 = vmin.f32 %v44_v7, 1.0 }
  0x3f   :  { %v51_v11 = vsel %vm46_vm1, %v78_v5, %v45_v8 }
  0x40   :  { %v52_v12 = vmax.f32 %v51_v11, 1e-08  ;;  %v56_v13 = vmul.f32 %v71_v10, %v51_v11 }
  0x42   :  { %79 = vlog2.f32 %v52_v12  ;;  %v57_v14 = vsub.f32 1.0, %v56_v13 }
  0x44   :  { %v58_v15 = vmul.f32 %v57_v14, %v57_v14 }
  0x46   :  { %v59_v16 = vmul.f32 %v58_v15, %v58_v15 }
  0x48   :  { %v60_v17 = vsel %vm47_vm0, %v59_v16, 1.0 }
  0x49   :  { %v61_v20 = vsel %vm46_vm1, %v57_v14, %v60_v17 }
  0x4f   :  { %v80_v18 = vpop.eup %79 }
  0x50   :  { %v54_v19 = vmul.f32 0.6931472, %v80_v18 }
  0x52   :  { %v55_v21 = vmul.f32 %v71_v10, %v54_v19 }
  0x54   :  { %v62_v22 = vmul.f32 %v61_v20, %v55_v21 }
  0x56   :  { %63 = vst [vmem:[%s159_s2] sm:$0xff] %v62_v22 }
  0x57   :  { %68 = vsyncpa [#allocation3], 1 }
  0x58   :  { %69 = vsyncpa [#allocation5], 1 }

</bundles_post_ra>
